<compile_context>
chip_gen: v7x
topology: tpu7x:2x2x1
jax: 0.10.0
libtpu: 0.0.40
codegen_flags: <defaults>
</compile_context>

<pallas_src>
import functools

import jax
import jax.numpy as jnp
from jax.experimental import pallas as pl
from jax.experimental.pallas import tpu as pltpu


def _round_up(x, m):
    return (x + m - 1) // m * m


def _pad2(a, rows, cols):
    return jnp.pad(a, ((0, rows - a.shape[0]), (0, cols - a.shape[1])))


def _policy_kernel(x_ref, w1_ref, b1_ref, w2_ref, b2_ref, w3_ref, b3_ref,
                   o_ref, logits_scr, m_scr, l_scr, *,
                   batch, tb, out_dim, need_mask, compute_dtype):
    """Fused: per-tile 3-layer MLP + online dim-0 softmax + finalize on last tile."""
    i = pl.program_id(0)
    n_tiles = pl.num_programs(0)

    # ---- 3-layer MLP on the MXU (bf16 operands, f32 accumulation) ----
    x = x_ref[...]                                                       # (tb, in_dim) bf16
    h1 = jnp.dot(x, w1_ref[...], preferred_element_type=jnp.float32) + b1_ref[...]
    h1 = jnp.maximum(h1, 0.0)
    h2 = jnp.dot(h1.astype(compute_dtype), w2_ref[...],
                 preferred_element_type=jnp.float32) + b2_ref[...]
    h2 = jnp.maximum(h2, 0.0)
    logits = jnp.dot(h2.astype(compute_dtype), w3_ref[...],
                     preferred_element_type=jnp.float32) + b3_ref[...]   # (tb, OUT_PAD) f32
    logits_scr[i] = logits                   # stays in VMEM; no HBM roundtrip

    # ---- dim-0 (batch-axis) softmax statistics; padded batch rows masked ----
    if need_mask:
        rows = jax.lax.broadcasted_iota(jnp.int32, logits.shape, 0) + i * tb
        stat_src = jnp.where(rows < batch, logits, -jnp.inf)
    else:
        stat_src = logits
    t_max = jnp.max(stat_src, axis=0, keepdims=True)                    # (1, OUT_PAD)
    t_sum = jnp.sum(jnp.exp(stat_src - t_max), axis=0, keepdims=True)   # (1, OUT_PAD)

    @pl.when(i == 0)
    def _():
        m_scr[...] = t_max
        l_scr[...] = t_sum

    @pl.when(i > 0)
    def _():
        m_old = m_scr[...]
        m_new = jnp.maximum(m_old, t_max)
        l_scr[...] = (l_scr[...] * jnp.exp(m_old - m_new)
                      + t_sum * jnp.exp(t_max - m_new))
        m_scr[...] = m_new

    # ---- finalize: normalize every tile from VMEM, write (num_tiles, tb, out_dim) ----
    @pl.when(i == n_tiles - 1)
    def _():
        m = m_scr[...][None]                                    # (1, 1, OUT_PAD)
        inv_l = pl.reciprocal(l_scr[...], approx=False)[None]   # exact; EUP op
        probs = jnp.exp(logits_scr[...] - m) * inv_l            # (n, tb, OUT_PAD)
        o_ref[...] = probs[:, :, :out_dim]                      # store only real columns


@functools.partial(jax.jit, static_argnames=("block_b",))
def mlp_softmax(x, w1, b1, w2, b2, w3, b3, *, block_b=1024):
    """Weights stored transposed vs. PyTorch, i.e. (in, out): computes softmax0(x @ W + b)."""
    compute_dtype = jnp.bfloat16
    B, input_dim = x.shape
    hidden = w1.shape[1]
    output_dim = w3.shape[1]

    H_PAD = _round_up(hidden, 128)        # 50 -> 128: full 128-lane vregs through the MLP
    OUT_PAD = _round_up(output_dim, 128)  # 4 -> 128: lane-dense MXU output / softmax math

    tb = _round_up(min(block_b, B), 16)   # multiple of 16: bf16 sublane-pair aligned (v5e)
    B_pad = _round_up(B, tb)
    num_tiles = B_pad // tb

    # Zero-pad params (padded lanes stay exactly 0 through matmuls / ReLU); bf16 matmul
    # operands, f32 biases.
    xp = _pad2(x, B_pad, input_dim).astype(compute_dtype)
    w1p = _pad2(w1, input_dim, H_PAD).astype(compute_dtype)
    b1p = _pad2(b1, 1, H_PAD).astype(jnp.float32)
    w2p = _pad2(w2, H_PAD, H_PAD).astype(compute_dtype)
    b2p = _pad2(b2, 1, H_PAD).astype(jnp.float32)
    w3p = _pad2(w3, H_PAD, OUT_PAD).astype(compute_dtype)
    b3p = _pad2(b3, 1, OUT_PAD).astype(jnp.float32)

    kernel = functools.partial(
        _policy_kernel, batch=B, tb=tb, out_dim=output_dim,
        need_mask=(B_pad != B), compute_dtype=compute_dtype)

    probs = pl.pallas_call(
        kernel,
        grid_spec=pltpu.PrefetchScalarGridSpec(
            num_scalar_prefetch=0,
            grid=(num_tiles,),
            in_specs=[
                pl.BlockSpec((tb, input_dim), lambda i: (i, 0)),     # x: streamed batch tiles
                pl.BlockSpec((input_dim, H_PAD), lambda i: (0, 0)),  # weights/biases resident
                pl.BlockSpec((1, H_PAD), lambda i: (0, 0)),
                pl.BlockSpec((H_PAD, H_PAD), lambda i: (0, 0)),
                pl.BlockSpec((1, H_PAD), lambda i: (0, 0)),
                pl.BlockSpec((H_PAD, OUT_PAD), lambda i: (0, 0)),
                pl.BlockSpec((1, OUT_PAD), lambda i: (0, 0)),
            ],
            # Output (tiny: B_pad * out_dim f32) is VMEM-resident across the grid and
            # written once in the finalize step; last block dim == full array dim (4).
            out_specs=pl.BlockSpec((num_tiles, tb, output_dim), lambda i: (0, 0, 0)),
            scratch_shapes=[
                pltpu.VMEM((num_tiles, tb, OUT_PAD), jnp.float32),   # logits (B_pad*512 B)
                pltpu.VMEM((1, OUT_PAD), jnp.float32),               # running column max
                pltpu.VMEM((1, OUT_PAD), jnp.float32),               # running sum-of-exp
            ],
        ),
        out_shape=jax.ShapeDtypeStruct((num_tiles, tb, output_dim), jnp.float32),
        compiler_params=pltpu.CompilerParams(
            # Softmax stats accumulate across batch tiles and the output block is
            # resident, so the grid axis is sequential ("arbitrary").
            dimension_semantics=("arbitrary",),
        ),
    )(xp, w1p, b1p, w2p, b2p, w3p, b3p)

    return probs.reshape(B_pad, output_dim)[:B]


def init_params(key, input_dim, hidden, output_dim):
    # Deterministic synthetic init (PyTorch-style uniform bounds: 1/sqrt(fan_in)).
    ks = jax.random.split(key, 6)

    def lin(kw, kb, fan_in, fan_out):
        bound = 1.0 / jnp.sqrt(jnp.float32(fan_in))
        w = jax.random.uniform(kw, (fan_in, fan_out), jnp.float32, -bound, bound)
        b = jax.random.uniform(kb, (1, fan_out), jnp.float32, -bound, bound)
        return w, b

    w1, b1 = lin(ks[0], ks[1], input_dim, hidden)
    w2, b2 = lin(ks[2], ks[3], hidden, hidden)
    w3, b3 = lin(ks[4], ks[5], hidden, output_dim)
    return w1, b1, w2, b2, w3, b3


def reference_forward(x, w1, b1, w2, b2, w3, b3):
    # Pure-JAX reference with the same bf16-matmul / f32-accumulate recipe.
    cd = jnp.bfloat16
    h1 = jnp.maximum(jnp.dot(x.astype(cd), w1.astype(cd),
                             preferred_element_type=jnp.float32) + b1, 0.0)
    h2 = jnp.maximum(jnp.dot(h1.astype(cd), w2.astype(cd),
                             preferred_element_type=jnp.float32) + b2, 0.0)
    logits = jnp.dot(h2.astype(cd), w3.astype(cd),
                     preferred_element_type=jnp.float32) + b3
    return jax.nn.softmax(logits, axis=0)   # torch.nn.Softmax(dim=0)


if __name__ == "__main__":
    key = jax.random.PRNGKey(0)
    k_x, k_p = jax.random.split(key)

    B, input_dim, hidden, output_dim = 70, 32, 50, 4
    x = jax.random.normal(k_x, (B, input_dim), jnp.float32)
    params = init_params(k_p, input_dim, hidden, output_dim)

    out = jax.block_until_ready(mlp_softmax(x, *params))                    # 1 tile (fast path)
    out_tiled = jax.block_until_ready(mlp_softmax(x, *params, block_b=16))  # 5 tiles + row mask

    ref = reference_forward(x, *params)

    assert out.shape == (B, output_dim)
    # Softmax over dim=0 => every column sums to 1 (exact reciprocal -> tight).
    col_sums = jnp.sum(out, axis=0)
    assert bool(jnp.allclose(col_sums, jnp.ones_like(col_sums), atol=1e-3))
    assert bool(jnp.allclose(out, ref, atol=2e-3, rtol=2e-2))
    assert bool(jnp.allclose(out_tiled, out, atol=1e-3, rtol=1e-3))

    print("KERNEL_OK")
</pallas_src>

<mosaic_0001>
module attributes {stable_mosaic.version = 11 : i64} {
  func.func @_policy_kernel(%arg0: i32, %arg1: memref<80x32xbf16, #tpu.memory_space<vmem>>, %arg2: memref<32x128xbf16, #tpu.memory_space<vmem>>, %arg3: memref<1x128xf32, #tpu.memory_space<vmem>>, %arg4: memref<128x128xbf16, #tpu.memory_space<vmem>>, %arg5: memref<1x128xf32, #tpu.memory_space<vmem>>, %arg6: memref<128x128xbf16, #tpu.memory_space<vmem>>, %arg7: memref<1x128xf32, #tpu.memory_space<vmem>>, %arg8: memref<1x80x4xf32, #tpu.memory_space<vmem>>, %arg9: memref<1x80x128xf32, #tpu.memory_space<vmem>>, %arg10: memref<1x128xf32, #tpu.memory_space<vmem>>, %arg11: memref<1x128xf32, #tpu.memory_space<vmem>>) attributes {dimension_semantics = [#tpu.dimension_semantics<arbitrary>], iteration_bounds = array<i64: 1>, scalar_prefetch = 0 : i64, scratch_operands = 3 : i64, tpu.core_type = #tpu.core_type<tc>, window_params = [{transform_indices = @transform_0, window_bounds = array<i64: 80, 32>}, {pipeline_mode = #tpu.pipeline_mode<synchronous>, transform_indices = @transform_1, window_bounds = array<i64: 32, 128>}, {pipeline_mode = #tpu.pipeline_mode<synchronous>, transform_indices = @transform_2, window_bounds = array<i64: 1, 128>}, {pipeline_mode = #tpu.pipeline_mode<synchronous>, transform_indices = @transform_3, window_bounds = array<i64: 128, 128>}, {pipeline_mode = #tpu.pipeline_mode<synchronous>, transform_indices = @transform_4, window_bounds = array<i64: 1, 128>}, {pipeline_mode = #tpu.pipeline_mode<synchronous>, transform_indices = @transform_5, window_bounds = array<i64: 128, 128>}, {pipeline_mode = #tpu.pipeline_mode<synchronous>, transform_indices = @transform_6, window_bounds = array<i64: 1, 128>}, {pipeline_mode = #tpu.pipeline_mode<synchronous>, transform_indices = @transform_7, window_bounds = array<i64: 1, 80, 4>}]} {
    %c0 = arith.constant 0 : index
    %c0_0 = arith.constant 0 : index
    %0 = vector.load %arg1[%c0, %c0_0] : memref<80x32xbf16, #tpu.memory_space<vmem>>, vector<80x32xbf16>
    %c0_1 = arith.constant 0 : index
    %c0_2 = arith.constant 0 : index
    %1 = vector.load %arg2[%c0_1, %c0_2] : memref<32x128xbf16, #tpu.memory_space<vmem>>, vector<32x128xbf16>
    %cst = arith.constant dense<0.000000e+00> : vector<80x128xf32>
    %2 = tpu.matmul %0, %1, %cst {dimension_numbers = #tpu.dot_dimension_numbers<[1], [0], [0], [1], [0, 0, 1, 1], [], []>} : vector<80x32xbf16>, vector<32x128xbf16>, vector<80x128xf32> -> vector<80x128xf32>
    %c0_3 = arith.constant 0 : index
    %c0_4 = arith.constant 0 : index
    %3 = vector.load %arg3[%c0_3, %c0_4] : memref<1x128xf32, #tpu.memory_space<vmem>>, vector<1x128xf32>
    %4 = vector.broadcast %3 : vector<1x128xf32> to vector<80x128xf32>
    %5 = arith.addf %2, %4 : vector<80x128xf32>
    %cst_5 = arith.constant 0.000000e+00 : f32
    %6 = vector.broadcast %cst_5 : f32 to vector<80x128xf32>
    %7 = arith.maximumf %5, %6 : vector<80x128xf32>
    %8 = arith.truncf %7 : vector<80x128xf32> to vector<80x128xbf16>
    %c0_6 = arith.constant 0 : index
    %c0_7 = arith.constant 0 : index
    %9 = vector.load %arg4[%c0_6, %c0_7] : memref<128x128xbf16, #tpu.memory_space<vmem>>, vector<128x128xbf16>
    %cst_8 = arith.constant dense<0.000000e+00> : vector<80x128xf32>
    %10 = tpu.matmul %8, %9, %cst_8 {dimension_numbers = #tpu.dot_dimension_numbers<[1], [0], [0], [1], [0, 0, 1, 1], [], []>} : vector<80x128xbf16>, vector<128x128xbf16>, vector<80x128xf32> -> vector<80x128xf32>
    %c0_9 = arith.constant 0 : index
    %c0_10 = arith.constant 0 : index
    %11 = vector.load %arg5[%c0_9, %c0_10] : memref<1x128xf32, #tpu.memory_space<vmem>>, vector<1x128xf32>
    %12 = vector.broadcast %11 : vector<1x128xf32> to vector<80x128xf32>
    %13 = arith.addf %10, %12 : vector<80x128xf32>
    %cst_11 = arith.constant 0.000000e+00 : f32
    %14 = vector.broadcast %cst_11 : f32 to vector<80x128xf32>
    %15 = arith.maximumf %13, %14 : vector<80x128xf32>
    %16 = arith.truncf %15 : vector<80x128xf32> to vector<80x128xbf16>
    %c0_12 = arith.constant 0 : index
    %c0_13 = arith.constant 0 : index
    %17 = vector.load %arg6[%c0_12, %c0_13] : memref<128x128xbf16, #tpu.memory_space<vmem>>, vector<128x128xbf16>
    %cst_14 = arith.constant dense<0.000000e+00> : vector<80x128xf32>
    %18 = tpu.matmul %16, %17, %cst_14 {dimension_numbers = #tpu.dot_dimension_numbers<[1], [0], [0], [1], [0, 0, 1, 1], [], []>} : vector<80x128xbf16>, vector<128x128xbf16>, vector<80x128xf32> -> vector<80x128xf32>
    %c0_15 = arith.constant 0 : index
    %c0_16 = arith.constant 0 : index
    %19 = vector.load %arg7[%c0_15, %c0_16] : memref<1x128xf32, #tpu.memory_space<vmem>>, vector<1x128xf32>
    %20 = vector.broadcast %19 : vector<1x128xf32> to vector<80x128xf32>
    %21 = arith.addf %18, %20 : vector<80x128xf32>
    %22 = arith.index_cast %arg0 : i32 to index
    %c0_17 = arith.constant 0 : index
    %c0_18 = arith.constant 0 : index
    %23 = vector.load %arg9[%22, %c0_17, %c0_18] : memref<1x80x128xf32, #tpu.memory_space<vmem>>, vector<1x80x128xf32>
    %24 = vector.shape_cast %23 : vector<1x80x128xf32> to vector<80x128xf32>
    %25 = vector.shape_cast %21 : vector<80x128xf32> to vector<1x80x128xf32>
    tpu.vector_store %arg9[%22, %c0_17, %c0_18], %25 {strides = array<i32>} : memref<1x80x128xf32, #tpu.memory_space<vmem>>, vector<1x80x128xf32>,
    %26 = tpu.iota {dimensions = array<i32: 0>} : vector<80x128xi32>
    %c80_i32 = arith.constant 80 : i32
    %27 = arith.muli %arg0, %c80_i32 : i32
    %28 = vector.broadcast %27 : i32 to vector<80x128xi32>
    %29 = arith.addi %26, %28 : vector<80x128xi32>
    %c70_i32 = arith.constant 70 : i32
    %30 = vector.broadcast %c70_i32 : i32 to vector<80x128xi32>
    %31 = arith.cmpi slt, %29, %30 : vector<80x128xi32>
    %cst_19 = arith.constant 0xFF800000 : f32
    %32 = vector.broadcast %cst_19 : f32 to vector<80x128xf32>
    %33 = arith.select %31, %21, %32 : vector<80x128xi1>, vector<80x128xf32>
    %cst_20 = arith.constant dense<0xFF800000> : vector<128xf32>
    %34 = vector.multi_reduction <maximumf>, %33, %cst_20 [0] : vector<80x128xf32> to vector<128xf32>
    %35 = vector.shape_cast %34 : vector<128xf32> to vector<1x128xf32>
    %36 = vector.broadcast %35 : vector<1x128xf32> to vector<80x128xf32>
    %37 = arith.subf %33, %36 : vector<80x128xf32>
    %38 = math.exp %37 : vector<80x128xf32>
    %cst_21 = arith.constant dense<0.000000e+00> : vector<128xf32>
    %39 = vector.multi_reduction <add>, %38, %cst_21 [0] : vector<80x128xf32> to vector<128xf32>
    %40 = vector.shape_cast %39 : vector<128xf32> to vector<1x128xf32>
    %c0_i32 = arith.constant 0 : i32
    %41 = arith.cmpi eq, %arg0, %c0_i32 : i32
    %42 = arith.extui %41 : i1 to i32
    %c0_i32_22 = arith.constant 0 : i32
    %43 = arith.cmpi ne, %42, %c0_i32_22 : i32
    scf.if %43 {
      %c0_27 = arith.constant 0 : index
      %c0_28 = arith.constant 0 : index
      %50 = vector.load %arg10[%c0_27, %c0_28] : memref<1x128xf32, #tpu.memory_space<vmem>>, vector<1x128xf32>
      tpu.vector_store %arg10[%c0_27, %c0_28], %35 {strides = array<i32>} : memref<1x128xf32, #tpu.memory_space<vmem>>, vector<1x128xf32>,
      %c0_29 = arith.constant 0 : index
      %c0_30 = arith.constant 0 : index
      %51 = vector.load %arg11[%c0_29, %c0_30] : memref<1x128xf32, #tpu.memory_space<vmem>>, vector<1x128xf32>
      tpu.vector_store %arg11[%c0_29, %c0_30], %40 {strides = array<i32>} : memref<1x128xf32, #tpu.memory_space<vmem>>, vector<1x128xf32>,
    } else {
    }
    %c0_i32_23 = arith.constant 0 : i32
    %44 = arith.cmpi sgt, %arg0, %c0_i32_23 : i32
    %45 = arith.extui %44 : i1 to i32
    %c0_i32_24 = arith.constant 0 : i32
    %46 = arith.cmpi ne, %45, %c0_i32_24 : i32
    scf.if %46 {
      %c0_27 = arith.constant 0 : index
      %c0_28 = arith.constant 0 : index
      %50 = vector.load %arg10[%c0_27, %c0_28] : memref<1x128xf32, #tpu.memory_space<vmem>>, vector<1x128xf32>
      %51 = arith.maximumf %50, %35 : vector<1x128xf32>
      %c0_29 = arith.constant 0 : index
      %c0_30 = arith.constant 0 : index
      %52 = vector.load %arg11[%c0_29, %c0_30] : memref<1x128xf32, #tpu.memory_space<vmem>>, vector<1x128xf32>
      %53 = arith.subf %50, %51 : vector<1x128xf32>
      %54 = math.exp %53 : vector<1x128xf32>
      %55 = arith.mulf %52, %54 : vector<1x128xf32>
      %56 = arith.subf %35, %51 : vector<1x128xf32>
      %57 = math.exp %56 : vector<1x128xf32>
      %58 = arith.mulf %40, %57 : vector<1x128xf32>
      %59 = arith.addf %55, %58 : vector<1x128xf32>
      %c0_31 = arith.constant 0 : index
      %c0_32 = arith.constant 0 : index
      %60 = vector.load %arg11[%c0_31, %c0_32] : memref<1x128xf32, #tpu.memory_space<vmem>>, vector<1x128xf32>
      tpu.vector_store %arg11[%c0_31, %c0_32], %59 {strides = array<i32>} : memref<1x128xf32, #tpu.memory_space<vmem>>, vector<1x128xf32>,
      %c0_33 = arith.constant 0 : index
      %c0_34 = arith.constant 0 : index
      %61 = vector.load %arg10[%c0_33, %c0_34] : memref<1x128xf32, #tpu.memory_space<vmem>>, vector<1x128xf32>
      tpu.vector_store %arg10[%c0_33, %c0_34], %51 {strides = array<i32>} : memref<1x128xf32, #tpu.memory_space<vmem>>, vector<1x128xf32>,
    } else {
    }
    %c0_i32_25 = arith.constant 0 : i32
    %47 = arith.cmpi eq, %arg0, %c0_i32_25 : i32
    %48 = arith.extui %47 : i1 to i32
    %c0_i32_26 = arith.constant 0 : i32
    %49 = arith.cmpi ne, %48, %c0_i32_26 : i32
    scf.if %49 {
      %c0_27 = arith.constant 0 : index
      %c0_28 = arith.constant 0 : index
      %50 = vector.load %arg10[%c0_27, %c0_28] : memref<1x128xf32, #tpu.memory_space<vmem>>, vector<1x128xf32>
      %51 = vector.shape_cast %50 : vector<1x128xf32> to vector<1x1x128xf32>
      %c0_29 = arith.constant 0 : index
      %c0_30 = arith.constant 0 : index
      %52 = vector.load %arg11[%c0_29, %c0_30] : memref<1x128xf32, #tpu.memory_space<vmem>>, vector<1x128xf32>
      %53 = tpu.reciprocal %52 : vector<1x128xf32> -> vector<1x128xf32>
      %54 = vector.shape_cast %53 : vector<1x128xf32> to vector<1x1x128xf32>
      %c0_31 = arith.constant 0 : index
      %c0_32 = arith.constant 0 : index
      %c0_33 = arith.constant 0 : index
      %55 = vector.load %arg9[%c0_31, %c0_32, %c0_33] : memref<1x80x128xf32, #tpu.memory_space<vmem>>, vector<1x80x128xf32>
      %56 = vector.broadcast %51 : vector<1x1x128xf32> to vector<1x80x128xf32>
      %57 = arith.subf %55, %56 : vector<1x80x128xf32>
      %58 = math.exp %57 : vector<1x80x128xf32>
      %59 = vector.broadcast %54 : vector<1x1x128xf32> to vector<1x80x128xf32>
      %60 = arith.mulf %58, %59 : vector<1x80x128xf32>
      %61 = vector.extract_strided_slice %60 {offsets = [0, 0, 0], sizes = [1, 80, 4], strides = [1, 1, 1]} : vector<1x80x128xf32> to vector<1x80x4xf32>
      %c0_34 = arith.constant 0 : index
      %c0_35 = arith.constant 0 : index
      %c0_36 = arith.constant 0 : index
      %62 = vector.load %arg8[%c0_34, %c0_35, %c0_36] : memref<1x80x4xf32, #tpu.memory_space<vmem>>, vector<1x80x4xf32>
      tpu.vector_store %arg8[%c0_34, %c0_35, %c0_36], %61 {strides = array<i32>} : memref<1x80x4xf32, #tpu.memory_space<vmem>>, vector<1x80x4xf32>,
    } else {
    }
    return
  }
  func.func @transform_0(%arg0: i32) -> (i32, i32) {
    %c0_i32 = arith.constant 0 : i32
    %c0_i32_0 = arith.constant 0 : i32
    return %arg0, %c0_i32 : i32, i32
  }
  func.func @transform_1(%arg0: i32) -> (i32, i32) {
    %c0_i32 = arith.constant 0 : i32
    %c0_i32_0 = arith.constant 0 : i32
    %c0_i32_1 = arith.constant 0 : i32
    return %c0_i32, %c0_i32_0 : i32, i32
  }
  func.func @transform_2(%arg0: i32) -> (i32, i32) {
    %c0_i32 = arith.constant 0 : i32
    %c0_i32_0 = arith.constant 0 : i32
    %c0_i32_1 = arith.constant 0 : i32
    return %c0_i32, %c0_i32_0 : i32, i32
  }
  func.func @transform_3(%arg0: i32) -> (i32, i32) {
    %c0_i32 = arith.constant 0 : i32
    %c0_i32_0 = arith.constant 0 : i32
    %c0_i32_1 = arith.constant 0 : i32
    return %c0_i32, %c0_i32_0 : i32, i32
  }
  func.func @transform_4(%arg0: i32) -> (i32, i32) {
    %c0_i32 = arith.constant 0 : i32
    %c0_i32_0 = arith.constant 0 : i32
    %c0_i32_1 = arith.constant 0 : i32
    return %c0_i32, %c0_i32_0 : i32, i32
  }
  func.func @transform_5(%arg0: i32) -> (i32, i32) {
    %c0_i32 = arith.constant 0 : i32
    %c0_i32_0 = arith.constant 0 : i32
    %c0_i32_1 = arith.constant 0 : i32
    return %c0_i32, %c0_i32_0 : i32, i32
  }
  func.func @transform_6(%arg0: i32) -> (i32, i32) {
    %c0_i32 = arith.constant 0 : i32
    %c0_i32_0 = arith.constant 0 : i32
    %c0_i32_1 = arith.constant 0 : i32
    return %c0_i32, %c0_i32_0 : i32, i32
  }
  func.func @transform_7(%arg0: i32) -> (i32, i32, i32) {
    %c0_i32 = arith.constant 0 : i32
    %c0_i32_0 = arith.constant 0 : i32
    %c0_i32_1 = arith.constant 0 : i32
    %c0_i32_2 = arith.constant 0 : i32
    return %c0_i32, %c0_i32_0, %c0_i32_1 : i32, i32, i32
  }
}

</mosaic_0001>

<bundles_post_ra>
// kernel: mlp_softmax.1
= control target key start
LH: loop header
LB: loop body
LE: loop exit
PB: predicated region body
PF: predicated region fallthrough
CT: control target
= control target key end

     0   :  { %v945_v0 = vmov 0.0   ;;  %vm946_vm0 = vmmov 0   ;;  %vm85_vm1 = vcmask 261120   ;;  %vm698_vm3 = vcmask 31744   ;;  %s1211_s1 = inlined_call_operand.vmem [shape: bf16[32,128], index: 1, kind: input, shape index: {}]   ;;  %s1212_s0 = inlined_call_operand.vmem [shape: bf16[80,32], index: 0, kind: input, shape index: {}]   ;;  %s1213_s3 = inlined_call_operand.vmem [shape: bf16[128,128], index: 3, kind: input, shape index: {}]   ;;  %s1214_s5 = inlined_call_operand.vmem [shape: bf16[128,128], index: 5, kind: input, shape index: {}]   ;;  %s1215_s2 = inlined_call_operand.vmem [shape: f32[1,128], index: 2, kind: input, shape index: {}]   ;;  %s1216_s4 = inlined_call_operand.vmem [shape: f32[1,128], index: 4, kind: input, shape index: {}]   ;;  %s1217_s6 = inlined_call_operand.vmem [shape: f32[1,128], index: 6, kind: input, shape index: {}]   ;;  %s1218_s7 = inlined_call_operand.vmem [shape: f32[1,80,4], index: 7, kind: output, shape index: {}]  }
   0x1   :  { %778 = vmatprep.subr.bf16.mxu0 %v945_v0  ;;  %v880_v1 = vld [vmem:[%s1211_s1] sm:$0xff]   ;;  %782 = vmatprep.mubr.msk.bf16.mxu0 %vm946_vm0, %v945_v0  ;;  %v881_v2 = vld [vmem:[%s1211_s1 + $0x8] sm:$0xff]   ;;  %v889_v8 = vld [vmem:[%s1213_s3 + $0x10] sm:$0xff]  }
   0x2   :  { %874 = vmatprep.subr.bf16.mxu1 %v945_v0  ;;  %798 = vmatprep.mubr.msk.bf16.mxu1 %vm946_vm0, %v945_v0  ;;  %v882_v3 = vld [vmem:[%s1212_s0] sm:$0xff]   ;;  %v888_v6 = vld [vmem:[%s1213_s3 + $0x8] sm:$0xff]   ;;  %v890_v9 = vld [vmem:[%s1213_s3 + $0x18] sm:$0xff]  }
   0x3   :  { %779 = vmatpush3.bf16.msra.mxu0 %v880_v1  ;;  %876 = vmatpush3.bf16.msra.mxu1 %v880_v1  ;;  %v886_v4 = vld [vmem:[%s1212_s0 + $0x20] sm:$0xff]   ;;  %v883_v7 = vld [vmem:[%s1212_s0 + $0x8] sm:$0xff]   ;;  %v884_v10 = vld [vmem:[%s1212_s0 + $0x10] sm:$0xff]  }
   0x4   :  { %780 = vmatprep.subr.bf16.mxu0 %v945_v0  ;;  %875 = vmatprep.subr.bf16.mxu1 %v945_v0  ;;  %v887_v5 = vld [vmem:[%s1213_s3] sm:$0xff]   ;;  %v892_v12 = vld [vmem:[%s1213_s3 + $0x28] sm:$0xff]   ;;  %v885_v13 = vld [vmem:[%s1212_s0 + $0x18] sm:$0xff]  }
   0x5   :  { %v891_v11 = vld [vmem:[%s1213_s3 + $0x20] sm:$0xff]   ;;  %v893_v14 = vld [vmem:[%s1213_s3 + $0x30] sm:$0xff]   ;;  %v894_v15 = vld [vmem:[%s1213_s3 + $0x38] sm:$0xff]  }
   0x6   :  { %v895_v16 = vld [vmem:[%s1214_s5] sm:$0xff]   ;;  %v896_v17 = vld [vmem:[%s1214_s5 + $0x8] sm:$0xff]   ;;  %v897_v18 = vld [vmem:[%s1214_s5 + $0x10] sm:$0xff]  }
   0x7   :  { %781 = vmatpush3.bf16.msra.mxu0 %v881_v2  ;;  %877 = vmatpush3.bf16.msra.mxu1 %v881_v2  ;;  %v898_v19 = vld [vmem:[%s1214_s5 + $0x18] sm:$0xff]   ;;  %v899_v20 = vld [vmem:[%s1214_s5 + $0x20] sm:$0xff]   ;;  %v900_v21 = vld [vmem:[%s1214_s5 + $0x28] sm:$0xff]  }
   0x8   :  { %802 = vmatprep.subr.bf16.mxu1 %v945_v0  ;;  %838 = vmatprep.subr.bf16.mxu0 %v945_v0  ;;  %v713_v22 = vld [vmem:[%s1215_s2] ss:$0 sm:$0xff] }
   0xa   :  { %783 = vmatmul.mubr.msk.bf16.vlgmr.msra.gmra.mrb[0].mxu0 %vm85_vm1, %v882_v3  ;;  %799 = vmatmul.mubr.msk.bf16.vlgmr.msra.gmra.mrb[0].mxu1 %vm85_vm1, %v886_v4 }
   0xb   :  { %786 = vmatprep.mubr.msk.bf16.mxu0 %vm946_vm0, %v945_v0  ;;  %803 = vmatpush3.bf16.msra.mxu1 %v887_v5  ;;  %v901_v5 = vld [vmem:[%s1214_s5 + $0x30] sm:$0xff]  }
   0xc   :  { %804 = vmatprep.subr.bf16.mxu1 %v945_v0  ;;  %818 = vmatprep.mubr.msk.bf16.mxu1 %vm946_vm0, %v945_v0 }
   0xd   :  { %839 = vmatpush3.bf16.msra.mxu0 %v895_v16 }
   0xe   :  { %840 = vmatprep.subr.bf16.mxu0 %v945_v0 }
   0xf   :  { %805 = vmatpush3.bf16.msra.mxu1 %v888_v6  ;;  %v902_v6 = vld [vmem:[%s1214_s5 + $0x38] sm:$0xff]  }
  0x10   :  { %806 = vmatprep.subr.bf16.mxu1 %v945_v0 }
  0x11   :  { %841 = vmatpush3.bf16.msra.mxu0 %v896_v17 }
  0x12   :  { %787 = vmatmul.mubr.msk.bf16.gmra.mrb[4].mxu0 %vm85_vm1, %v883_v7  ;;  %842 = vmatprep.subr.bf16.mxu0 %v945_v0  ;;  %v726_v7 = vld [vmem:[%s1216_s4] ss:$0 sm:$0xff] }
  0x13   :  { %790 = vmatprep.mubr.msk.bf16.mxu0 %vm946_vm0, %v945_v0  ;;  %807 = vmatpush3.bf16.msra.mxu1 %v889_v8 }
  0x14   :  { %808 = vmatprep.subr.bf16.mxu1 %v945_v0 }
  0x15   :  { %843 = vmatpush3.bf16.msra.mxu0 %v897_v18 }
  0x16   :  { %844 = vmatprep.subr.bf16.mxu0 %v945_v0 }
  0x17   :  { %809 = vmatpush3.bf16.msra.mxu1 %v890_v9 }
  0x18   :  { %810 = vmatprep.subr.bf16.mxu1 %v945_v0 }
  0x19   :  { %845 = vmatpush3.bf16.msra.mxu0 %v898_v19 }
  0x1a   :  { %791 = vmatmul.mubr.msk.bf16.gmra.mrb[8].mxu0 %vm85_vm1, %v884_v10  ;;  %846 = vmatprep.subr.bf16.mxu0 %v945_v0 }
  0x1b   :  { %794 = vmatprep.mubr.msk.bf16.mxu0 %vm946_vm0, %v945_v0  ;;  %811 = vmatpush3.bf16.msra.mxu1 %v891_v11 }
  0x1c   :  { %812 = vmatprep.subr.bf16.mxu1 %v945_v0 }
  0x1d   :  { %847 = vmatpush3.bf16.msra.mxu0 %v899_v20 }
  0x1e   :  { %848 = vmatprep.subr.bf16.mxu0 %v945_v0 }
  0x1f   :  { %813 = vmatpush3.bf16.msra.mxu1 %v892_v12 }
  0x20   :  { %814 = vmatprep.subr.bf16.mxu1 %v945_v0 }
  0x21   :  { %849 = vmatpush3.bf16.msra.mxu0 %v900_v21 }
  0x22   :  { %795 = vmatmul.mubr.msk.bf16.gmra.mrb[12].mxu0 %vm85_vm1, %v885_v13  ;;  %850 = vmatprep.subr.bf16.mxu0 %v945_v0 }
  0x23   :  { %854 = vmatprep.mubr.msk.bf16.mxu0 %vm946_vm0, %v945_v0  ;;  %815 = vmatpush3.bf16.msra.mxu1 %v893_v14 }
  0x24   :  { %816 = vmatprep.subr.bf16.mxu1 %v945_v0 }
  0x25   :  { %851 = vmatpush3.bf16.msra.mxu0 %v901_v5 }
  0x26   :  { %852 = vmatprep.subr.bf16.mxu0 %v945_v0 }
  0x27   :  { %817 = vmatpush3.bf16.msra.mxu1 %v894_v15 }
  0x29   :  { %853 = vmatpush3.bf16.msra.mxu0 %v902_v6 }
  0xdd   :  { %v135_v23 = vpop.f32.mrb[0].mxu0  ;;  %v167_v24 = vpop.f32.mrb[0].mxu1 }
  0xde   :  { %v136_v25 = vadd.f32 %v713_v22, %v135_v23  ;;  %v784_v26 = vpop.f32.mrb[1].mxu0  ;;  %v168_v27 = vadd.f32 %v713_v22, %v167_v24  ;;  %v800_v28 = vpop.f32.mrb[1].mxu1 }
  0xdf   :  { %v138_v29 = vpop.f32.mrb[2].mxu0  ;;  %v170_v30 = vpop.f32.mrb[2].mxu1 }
  0xe0   :  { %v139_v31 = vadd.f32 %v713_v22, %v138_v29  ;;  %v785_v32 = vpop.f32.mrb[3].mxu0  ;;  %v182_v33 = vmax.f32 %v168_v27, 0.0  ;;  %v171_v34 = vadd.f32 %v713_v22, %v170_v30  ;;  %v801_v35 = vpop.f32.mrb[3].mxu1  ;;  %v174_v36 = vmax.f32 %v136_v25, 0.0 }
  0xe2   :  { %v175_v37 = vmax.f32 %v139_v31, 0.0  ;;  %v183_v38 = vmax.f32 %v171_v34, 0.0 }
  0xe4   :  { %v184_v39 = vpack.c.bf16 %v175_v37, %v174_v36  ;;  %v188_v40 = vpack.c.bf16 %v183_v38, %v182_v33 }
  0xe5   :  { %v143_v41 = vpop.f32.mrb[4].mxu0 }
  0xe6   :  { %v144_v42 = vadd.f32 %v713_v22, %v143_v41  ;;  %v788_v43 = vpop.f32.mrb[5].mxu0  ;;  %819 = vmatmul.mubr.bf16.vlgmr.msra.gmra.mrb[4].mxu1 %v184_v39 }
  0xe7   :  { %v146_v44 = vpop.f32.mrb[6].mxu0  ;;  %822 = vmatprep.mubr.msk.bf16.mxu1 %vm946_vm0, %v945_v0 }
  0xe8   :  { %v147_v45 = vadd.f32 %v713_v22, %v146_v44  ;;  %v789_v46 = vpop.f32.mrb[7].mxu0  ;;  %v176_v47 = vmax.f32 %v144_v42, 0.0 }
  0xea   :  { %v177_v48 = vmax.f32 %v147_v45, 0.0 }
  0xec   :  { %v185_v49 = vpack.c.bf16 %v177_v48, %v176_v47 }
  0xed   :  { %v151_v50 = vpop.f32.mrb[8].mxu0 }
  0xee   :  { %v152_v51 = vadd.f32 %v713_v22, %v151_v50  ;;  %v792_v52 = vpop.f32.mrb[9].mxu0  ;;  %823 = vmatmul.mubr.bf16.gmra.mrb[8].mxu1 %v185_v49 }
  0xef   :  { %v154_v53 = vpop.f32.mrb[10].mxu0  ;;  %826 = vmatprep.mubr.msk.bf16.mxu1 %vm946_vm0, %v945_v0 }
  0xf0   :  { %v155_v54 = vadd.f32 %v713_v22, %v154_v53  ;;  %v793_v55 = vpop.f32.mrb[11].mxu0  ;;  %v178_v56 = vmax.f32 %v152_v51, 0.0 }
  0xf2   :  { %v179_v57 = vmax.f32 %v155_v54, 0.0 }
  0xf4   :  { %v186_v58 = vpack.c.bf16 %v179_v57, %v178_v56 }
  0xf5   :  { %v159_v59 = vpop.f32.mrb[12].mxu0 }
  0xf6   :  { %v160_v60 = vadd.f32 %v713_v22, %v159_v59  ;;  %v796_v61 = vpop.f32.mrb[13].mxu0  ;;  %827 = vmatmul.mubr.bf16.gmra.mrb[12].mxu1 %v186_v58 }
  0xf7   :  { %v162_v62 = vpop.f32.mrb[14].mxu0  ;;  %830 = vmatprep.mubr.msk.bf16.mxu1 %vm946_vm0, %v945_v0  ;;  %v735_v61 = vld [vmem:[%s1217_s6] ss:$0 sm:$0xff] }
  0xf8   :  { %v163_v63 = vadd.f32 %v713_v22, %v162_v62  ;;  %v797_v1 = vpop.f32.mrb[15].mxu0  ;;  %v180_v2 = vmax.f32 %v160_v60, 0.0 }
  0xfa   :  { %v181_v3 = vmax.f32 %v163_v63, 0.0 }
  0xfc   :  { %v187_v4 = vpack.c.bf16 %v181_v3, %v180_v2 }
  0xfe   :  { %831 = vmatmul.mubr.bf16.gmra.mrb[16].mxu1 %v187_v4 }
  0xff   :  { %834 = vmatprep.mubr.msk.bf16.mxu1 %vm946_vm0, %v945_v0 }
 0x106   :  { %835 = vmatmul.mubr.bf16.gmra.mrb[20].mxu1 %v188_v40 }
 0x1b9   :  { %v294_v8 = vpop.f32.mrb[4].mxu1 }
 0x1ba   :  { %v295_v9 = vadd.f32 %v726_v7, %v294_v8  ;;  %v820_v10 = vpop.f32.mrb[5].mxu1 }
 0x1bb   :  { %v297_v11 = vpop.f32.mrb[6].mxu1 }
 0x1bc   :  { %v298_v12 = vadd.f32 %v726_v7, %v297_v11  ;;  %v821_v13 = vpop.f32.mrb[7].mxu1  ;;  %v333_v14 = vmax.f32 %v295_v9, 0.0 }
 0x1be   :  { %v334_v15 = vmax.f32 %v298_v12, 0.0 }
 0x1c0   :  { %v343_v16 = vpack.c.bf16 %v334_v15, %v333_v14 }
 0x1c1   :  { %v302_v17 = vpop.f32.mrb[8].mxu1 }
 0x1c2   :  { %v303_v18 = vadd.f32 %v726_v7, %v302_v17  ;;  %v824_v19 = vpop.f32.mrb[9].mxu1  ;;  %855 = vmatmul.mubr.bf16.vlgmr.msra.gmra.mrb[16].mxu0 %v343_v16 }
 0x1c3   :  { %v305_v20 = vpop.f32.mrb[10].mxu1  ;;  %858 = vmatprep.mubr.msk.bf16.mxu0 %vm946_vm0, %v945_v0 }
 0x1c4   :  { %v306_v21 = vadd.f32 %v726_v7, %v305_v20  ;;  %v825_v22 = vpop.f32.mrb[11].mxu1  ;;  %v335_v23 = vmax.f32 %v303_v18, 0.0 }
 0x1c6   :  { %v336_v24 = vmax.f32 %v306_v21, 0.0 }
 0x1c8   :  { %v344_v25 = vpack.c.bf16 %v336_v24, %v335_v23 }
 0x1c9   :  { %v310_v26 = vpop.f32.mrb[12].mxu1 }
 0x1ca   :  { %v311_v27 = vadd.f32 %v726_v7, %v310_v26  ;;  %v828_v28 = vpop.f32.mrb[13].mxu1  ;;  %859 = vmatmul.mubr.bf16.gmra.mrb[20].mxu0 %v344_v25 }
 0x1cb   :  { %v313_v29 = vpop.f32.mrb[14].mxu1  ;;  %862 = vmatprep.mubr.msk.bf16.mxu0 %vm946_vm0, %v945_v0 }
 0x1cc   :  { %v314_v30 = vadd.f32 %v726_v7, %v313_v29  ;;  %v829_v31 = vpop.f32.mrb[15].mxu1  ;;  %v337_v32 = vmax.f32 %v311_v27, 0.0 }
 0x1ce   :  { %v338_v33 = vmax.f32 %v314_v30, 0.0 }
 0x1d0   :  { %v345_v34 = vpack.c.bf16 %v338_v33, %v337_v32 }
 0x1d1   :  { %v318_v35 = vpop.f32.mrb[16].mxu1 }
 0x1d2   :  { %v319_v36 = vadd.f32 %v726_v7, %v318_v35  ;;  %v832_v37 = vpop.f32.mrb[17].mxu1  ;;  %863 = vmatmul.mubr.bf16.gmra.mrb[24].mxu0 %v345_v34 }
 0x1d3   :  { %v321_v38 = vpop.f32.mrb[18].mxu1  ;;  %866 = vmatprep.mubr.msk.bf16.mxu0 %vm946_vm0, %v945_v0 }
 0x1d4   :  { %v322_v39 = vadd.f32 %v726_v7, %v321_v38  ;;  %v833_v40 = vpop.f32.mrb[19].mxu1  ;;  %v339_v41 = vmax.f32 %v319_v36, 0.0 }
 0x1d6   :  { %v340_v42 = vmax.f32 %v322_v39, 0.0 }
 0x1d8   :  { %v346_v43 = vpack.c.bf16 %v340_v42, %v339_v41 }
 0x1d9   :  { %v326_v44 = vpop.f32.mrb[20].mxu1 }
 0x1da   :  { %v327_v45 = vadd.f32 %v726_v7, %v326_v44  ;;  %v836_v46 = vpop.f32.mrb[21].mxu1  ;;  %867 = vmatmul.mubr.bf16.gmra.mrb[28].mxu0 %v346_v43 }
 0x1db   :  { %v329_v47 = vpop.f32.mrb[22].mxu1  ;;  %870 = vmatprep.mubr.msk.bf16.mxu0 %vm946_vm0, %v945_v0 }
 0x1dc   :  { %v330_v48 = vadd.f32 %v726_v7, %v329_v47  ;;  %v837_v49 = vpop.f32.mrb[23].mxu1  ;;  %v341_v50 = vmax.f32 %v327_v45, 0.0  ;;  %v504_v7 = vlaneseq }
 0x1de   :  { %v342_v51 = vmax.f32 %v330_v48, 0.0  ;;  %v1132_v10 = vshrl.u32 %v504_v7, 7 }
 0x1e0   :  { %v347_v52 = vpack.c.bf16 %v342_v51, %v341_v50  ;;  %v513_v19 = vadd.s32 64, %v1132_v10 }
 0x1e2   :  { %871 = vmatmul.mubr.bf16.gmra.mrb[32].mxu0 %v347_v52  ;;  %vm534_vm2 = vcmp.lt.s32.totalorder %v513_v19, 70 }
 0x295   :  { %v453_v53 = vpop.f32.mrb[16].mxu0 }
 0x296   :  { %v856_v54 = vpop.f32.mrb[17].mxu0  ;;  %v1120_v0 = vadd.f32 %v735_v61, %v453_v53 }
 0x297   :  { %v456_v55 = vpop.f32.mrb[18].mxu0 }
 0x298   :  { %v857_v56 = vpop.f32.mrb[19].mxu0  ;;  %v1124_v3 = vadd.f32 %v735_v61, %v456_v55 }
 0x29d   :  { %v461_v57 = vpop.f32.mrb[20].mxu0 }
 0x29e   :  { %v860_v58 = vpop.f32.mrb[21].mxu0  ;;  %v1134_v11 = vadd.f32 %v735_v61, %v461_v57 }
 0x29f   :  { %v464_v59 = vpop.f32.mrb[22].mxu0 }
 0x2a0   :  { %v861_v60 = vpop.f32.mrb[23].mxu0  ;;  %v1138_v15 = vadd.f32 %v735_v61, %v464_v59 }
 0x2a5   :  { %v469_v62 = vpop.f32.mrb[24].mxu0 }
 0x2a6   :  { %v1122_v63 = vadd.f32 %v735_v61, %v469_v62  ;;  %v864_v1 = vpop.f32.mrb[25].mxu0 }
 0x2a7   :  { %v472_v2 = vpop.f32.mrb[26].mxu0 }
 0x2a8   :  { %v546_v4 = vmax.f32 %v1120_v0, %v1122_v63  ;;  %v1128_v5 = vadd.f32 %v735_v61, %v472_v2  ;;  %v865_v6 = vpop.f32.mrb[27].mxu0 }
 0x2aa   :  { %v547_v8 = vmax.f32 %v1124_v3, %v1128_v5 }
 0x2ad   :  { %v477_v9 = vpop.f32.mrb[28].mxu0 }
 0x2ae   :  { %v1136_v12 = vadd.f32 %v735_v61, %v477_v9  ;;  %v868_v13 = vpop.f32.mrb[29].mxu0 }
 0x2af   :  { %v480_v14 = vpop.f32.mrb[30].mxu0 }
 0x2b0   :  { %v548_v16 = vmax.f32 %v1134_v11, %v1136_v12  ;;  %v1142_v17 = vadd.f32 %v735_v61, %v480_v14  ;;  %v869_v18 = vpop.f32.mrb[31].mxu0 }
 0x2b2   :  { %v549_v20 = vmax.f32 %v1138_v15, %v1142_v17 }
 0x2b4   :  { %v553_v21 = vmax.f32 %v548_v16, %v549_v20 }
 0x2b5   :  { %v485_v22 = vpop.f32.mrb[32].mxu0 }
 0x2b6   :  { %v1147_v23 = vadd.f32 %v735_v61, %v485_v22  ;;  %v872_v24 = vpop.f32.mrb[33].mxu0 }
 0x2b7   :  { %v488_v25 = vpop.f32.mrb[34].mxu0 }
 0x2b8   :  { %v544_v26 = vsel %vm534_vm2, %v1147_v23, -inf  ;;  %v1150_v27 = vadd.f32 %v735_v61, %v488_v25  ;;  %v873_v28 = vpop.f32.mrb[35].mxu0 }
 0x2b9   :  { %v550_v29 = vmax.f32 %v546_v4, %v544_v26 }
 0x2bb   :  { %v552_v30 = vmax.f32 %v550_v29, %v547_v8 }
 0x2bd   :  { %v554_v31 = vmax.f32 %v552_v30, %v553_v21 }
 0x2bf   :  { %v555_v32 = vrot.slane %v554_v31, 4 }
 0x2c1   :  { %v556_v33 = vmax.f32 %v554_v31, %v555_v32 }
 0x2c3   :  { %v557_v34 = vrot.slane %v556_v33, 2 }
 0x2c5   :  { %v558_v35 = vmax.f32 %v556_v33, %v557_v34 }
 0x2c7   :  { %v559_v36 = vrot.slane %v558_v35, 1 }
 0x2c9   :  { %v560_v37 = vmax.f32 %v558_v35, %v559_v36 }
 0x2cb   :  { %v561_v38 = vsub.f32 %v1120_v0, %v560_v37  ;;  %v562_v39 = vsub.f32 %v1124_v3, %v560_v37  ;;  %v563_v40 = vsub.f32 %v1134_v11, %v560_v37  ;;  %v564_v41 = vsub.f32 %v1138_v15, %v560_v37  ;;  %610 = vst [vmem:[#allocation3] sm:$0x1] %v560_v37 }
 0x2cc   :  { %v565_v42 = vsub.f32 %v1122_v63, %v560_v37  ;;  %v566_v43 = vsub.f32 %v1128_v5, %v560_v37  ;;  %v567_v44 = vsub.f32 %v1136_v12, %v560_v37  ;;  %v568_v45 = vsub.f32 %v1142_v17, %v560_v37 }
 0x2cd   :  { %v569_v46 = vsub.f32 %v544_v26, %v560_v37  ;;  %v571_v47 = vmul.f32 1.442695, %v561_v38  ;;  %v573_v48 = vmul.f32 1.442695, %v562_v39  ;;  %v575_v49 = vmul.f32 1.442695, %v563_v40 }
 0x2ce   :  { %v577_v50 = vmul.f32 1.442695, %v564_v41  ;;  %v579_v51 = vmul.f32 1.442695, %v565_v42  ;;  %v581_v52 = vmul.f32 1.442695, %v566_v43 }
 0x2cf   :  { %903 = vpow2.f32 %v571_v47  ;;  %v583_v53 = vmul.f32 1.442695, %v567_v44  ;;  %v570_v54 = vsub.f32 -inf, %v560_v37  ;;  %v585_v55 = vmul.f32 1.442695, %v568_v45 }
 0x2d0   :  { %905 = vpow2.f32 %v573_v48  ;;  %v587_v58 = vmul.f32 1.442695, %v569_v46  ;;  %v685_v47 = vsub.s32 0, %v1132_v10 }
 0x2d1   :  { %907 = vpow2.f32 %v575_v49  ;;  %v589_v61 = vmul.f32 1.442695, %v570_v54 }
 0x2d2   :  { %909 = vpow2.f32 %v577_v50  ;;  %v744_v25 = vld [vmem:[#allocation3] ss:$0 sm:$0xff] }
 0x2d3   :  { %911 = vpow2.f32 %v579_v51  ;;  %v652_v29 = vsub.f32 %v1120_v0, %v744_v25  ;;  %v653_v30 = vsub.f32 %v1124_v3, %v744_v25  ;;  %v654_v32 = vsub.f32 %v1134_v11, %v744_v25 }
 0x2d4   :  { %913 = vpow2.f32 %v581_v52  ;;  %v655_v33 = vsub.f32 %v1138_v15, %v744_v25  ;;  %v656_v35 = vsub.f32 %v1122_v63, %v744_v25  ;;  %v657_v37 = vsub.f32 %v1128_v5, %v744_v25 }
 0x2d5   :  { %915 = vpow2.f32 %v583_v53  ;;  %v662_v36 = vmul.f32 1.442695, %v652_v29  ;;  %v664_v38 = vmul.f32 1.442695, %v653_v30  ;;  %v666_v39 = vmul.f32 1.442695, %v654_v32 }
 0x2d6   :  { %917 = vpow2.f32 %v585_v55  ;;  %v658_v40 = vsub.f32 %v1136_v12, %v744_v25  ;;  %v668_v41 = vmul.f32 1.442695, %v655_v33  ;;  %v659_v0 = vsub.f32 %v1142_v17, %v744_v25 }
 0x2d7   :  { %919 = vpow2.f32 %v587_v58  ;;  %v670_v3 = vmul.f32 1.442695, %v656_v35  ;;  %v660_v11 = vsub.f32 %v1147_v23, %v744_v25  ;;  %v672_v15 = vmul.f32 1.442695, %v657_v37 }
 0x2d8   :  { %921 = vpow2.f32 %v589_v61  ;;  %v661_v63 = vsub.f32 %v1150_v27, %v744_v25  ;;  %v674_v42 = vmul.f32 1.442695, %v658_v40  ;;  %v676_v5 = vmul.f32 1.442695, %v659_v0 }
 0x2d9   :  { %v904_v56 = vpop.eup %903  ;;  %923 = vpow2.f32 %v662_v36  ;;  %v678_v44 = vmul.f32 1.442695, %v660_v11 }
 0x2da   :  { %v906_v57 = vpop.eup %905  ;;  %925 = vpow2.f32 %v664_v38  ;;  %v680_v12 = vmul.f32 1.442695, %v661_v63 }
 0x2db   :  { %v591_v59 = vadd.f32 %v906_v57, %v904_v56  ;;  %v908_v60 = vpop.eup %907  ;;  %927 = vpow2.f32 %v666_v39 }
 0x2dc   :  { %v910_v1 = vpop.eup %909  ;;  %929 = vpow2.f32 %v668_v41 }
 0x2dd   :  { %v592_v62 = vadd.f32 %v908_v60, %v591_v59  ;;  %v912_v4 = vpop.eup %911  ;;  %931 = vpow2.f32 %v670_v3 }
 0x2de   :  { %v914_v7 = vpop.eup %913  ;;  %933 = vpow2.f32 %v672_v15 }
 0x2df   :  { %v593_v2 = vadd.f32 %v910_v1, %v592_v62  ;;  %v916_v9 = vpop.eup %915 }
 0x2e0   :  { %v918_v14 = vpop.eup %917 }
 0x2e1   :  { %v594_v6 = vadd.f32 %v912_v4, %v593_v2  ;;  %v920_v18 = vpop.eup %919 }
 0x2e2   :  { %v922_v20 = vpop.eup %921 }
 0x2e3   :  { %v595_v8 = vadd.f32 %v914_v7, %v594_v6  ;;  %v924_v17 = vpop.eup %923 }
 0x2e4   :  { %v926_v23 = vpop.eup %925 }
 0x2e5   :  { %v596_v13 = vadd.f32 %v916_v9, %v595_v8  ;;  %v928_v45 = vpop.eup %927 }
 0x2e6   :  { %v930_v46 = vpop.eup %929 }
 0x2e7   :  { %v597_v16 = vadd.f32 %v918_v14, %v596_v13  ;;  %v932_v27 = vpop.eup %931 }
 0x2e8   :  { %v934_v48 = vpop.eup %933 }
 0x2e9   :  { %v598_v19 = vadd.f32 %v920_v18, %v597_v16 }
 0x2eb   :  { %v599_v21 = vadd.f32 %v922_v20, %v598_v19 }
 0x2ed   :  { %v600_v22 = vrot.slane %v599_v21, 4 }
 0x2ef   :  { %v601_v24 = vadd.f32 %v600_v22, %v599_v21 }
 0x2f1   :  { %v602_v26 = vrot.slane %v601_v24, 2 }
 0x2f3   :  { %v603_v28 = vadd.f32 %v602_v26, %v601_v24 }
 0x2f5   :  { %v604_v31 = vrot.slane %v603_v28, 1 }
 0x2f7   :  { %v605_v34 = vadd.f32 %v604_v31, %v603_v28 }
 0x2f9   :  { %611 = vst [vmem:[#allocation4] sm:$0x1] %v605_v34 }
 0x300   :  { %v634_v43 = vld [vmem:[#allocation4] sm:$0x1] }
 0x301   :  { %935 = vrcp.f32 %v634_v43 }
 0x302   :  { %937 = vpow2.f32 %v674_v42 }
 0x303   :  { %939 = vpow2.f32 %v676_v5 }
 0x304   :  { %941 = vpow2.f32 %v678_v44 }
 0x305   :  { %943 = vpow2.f32 %v680_v12 }
 0x30b   :  { %v936_v49 = vpop.eup %935 }
 0x30c   :  { %v938_v50 = vpop.eup %937  ;;  %v686_v51 = vrot.slane %v936_v49, %v685_v47 }
 0x30d   :  { %v940_v52 = vpop.eup %939 }
 0x30e   :  { %v942_v53 = vpop.eup %941  ;;  %v688_v54 = vmul.f32 %v924_v17, %v686_v51  ;;  %v689_v55 = vmul.f32 %v926_v23, %v686_v51  ;;  %v690_v56 = vmul.f32 %v928_v45, %v686_v51  ;;  %v691_v57 = vmul.f32 %v930_v46, %v686_v51 }
 0x30f   :  { %v944_v58 = vpop.eup %943  ;;  %v692_v59 = vmul.f32 %v932_v27, %v686_v51  ;;  %v693_v60 = vmul.f32 %v934_v48, %v686_v51  ;;  %v694_v61 = vmul.f32 %v938_v50, %v686_v51  ;;  %v695_v62 = vmul.f32 %v940_v52, %v686_v51 }
 0x310   :  { %v696_v1 = vmul.f32 %v942_v53, %v686_v51  ;;  %699 = vst.msk [vmem:[%s1218_s7] sm:$0xff] %vm698_vm3, %v688_v54  ;;  %700 = vst.msk [vmem:[%s1218_s7 + $0x8] sm:$0xff] %vm698_vm3, %v689_v55  ;;  %v697_v10 = vmul.f32 %v944_v58, %v686_v51 }
 0x311   :  { %701 = vst.msk [vmem:[%s1218_s7 + $0x10] sm:$0xff] %vm698_vm3, %v690_v56  ;;  %702 = vst.msk [vmem:[%s1218_s7 + $0x18] sm:$0xff] %vm698_vm3, %v691_v57 }
 0x312   :  { %703 = vst.msk [vmem:[%s1218_s7 + $0x20] sm:$0xff] %vm698_vm3, %v692_v59  ;;  %704 = vst.msk [vmem:[%s1218_s7 + $0x28] sm:$0xff] %vm698_vm3, %v693_v60 }
 0x313   :  { %705 = vst.msk [vmem:[%s1218_s7 + $0x30] sm:$0xff] %vm698_vm3, %v694_v61  ;;  %706 = vst.msk [vmem:[%s1218_s7 + $0x38] sm:$0xff] %vm698_vm3, %v695_v62 }
 0x314   :  { %707 = vst.msk [vmem:[%s1218_s7 + $0x40] sm:$0xff] %vm698_vm3, %v696_v1  ;;  %708 = vst.msk [vmem:[%s1218_s7 + $0x48] sm:$0xff] %vm698_vm3, %v697_v10 }

</bundles_post_ra>
